<compile_context>
chip_gen: v5e
topology: v5e:2x2
jax: 0.10.0
libtpu: 0.0.40
codegen_flags: <defaults>
</compile_context>

<pallas_src>
import jax
import jax.numpy as jnp
from jax.experimental import pallas as pl
from jax.experimental.pallas import tpu as pltpu


# --------------------------------------------------------------------------- #
# Kernel
# --------------------------------------------------------------------------- #
def _make_kernel(use_scratch: bool):
    """Build the kernel. If `use_scratch` is False the (f32) output block is
    used directly as the accumulator (it is resident across the s axis)."""

    def kernel(alpha_ref, a_ref, out_ref, *scratch):
        # alpha_ref: (n_s, tB, tS)  lane-dense, resident across h and s axes
        # a_ref:     (tB, tS, tH)
        # out_ref:   (tB, tH)
        # scratch:   optional (tB, tH) f32 accumulator (non-f32 outputs only)
        acc_ref = scratch[0] if use_scratch else out_ref
        s_idx = pl.program_id(2)

        @pl.when(s_idx == 0)
        def _init():
            acc_ref[...] = jnp.zeros_like(acc_ref)

        # Current s-chunk of alpha: documented dynamic first-axis index.
        alpha_s = alpha_ref[s_idx].astype(jnp.float32)[..., None]   # (tB, tS, 1)
        a_t = a_ref[...].astype(jnp.float32)                        # (tB, tS, tH)

        # VPU broadcast-multiply + sublane reduce (compute slots have huge
        # slack for this HBM-bound op; avoids a degenerate M=1 MXU matmul).
        acc_ref[...] += jnp.sum(alpha_s * a_t, axis=1)               # (tB, tH)

        if use_scratch:
            @pl.when(s_idx == pl.num_programs(2) - 1)
            def _flush():
                out_ref[...] = acc_ref[...].astype(out_ref.dtype)

    return kernel


# --------------------------------------------------------------------------- #
# Tiling helpers
# --------------------------------------------------------------------------- #
def _round_up(x, m):
    return -(-x // m) * m


def _vmem_limit_bytes():
    """Generation-aware scoped VMEM limit (~75% of physical, clamped)."""
    try:
        cap = int(pltpu.get_tpu_info().vmem_capacity_bytes)
    except Exception:
        cap = 64 * 1024 * 1024  # conservative: v7x per-core VMEM
    return max(32 * 1024 * 1024, min(cap * 3 // 4, 100 * 1024 * 1024))


def _default_block_h(H, n_b_tiles):
    """Hidden-dim tile: multiple of 128 (lane-dense); capped so that when B
    only yields one b-tile there are >= 2 parallel h-tiles (v7x megacore)."""
    if H % 128 != 0:
        return H  # must use the full dim (sub-128 / unaligned H)
    cap = 512
    if n_b_tiles == 1 and H >= 256:
        cap = min(cap, max(128, (H // 2) // 128 * 128))
    t = min(cap, H)
    t = (t // 128) * 128
    while t >= 128:
        if H % t == 0:
            return t
        t -= 128
    return H


def _choose_block_s(S, max_rows):
    """Pick the sequence (reduction) tile. Returns (block_s, padded_S)."""
    max_rows = max(8, (max_rows // 8) * 8)
    if S <= max_rows:
        return S, S
    # Prefer a multiple-of-8 divisor of S in [max_rows/2, max_rows]: no padding.
    t = max_rows
    while t >= max(8, max_rows // 2):
        if S % t == 0:
            return t, S
        t -= 8
    # Otherwise split as evenly as possible and zero-pad the tail tile.
    n = -(-S // max_rows)
    block_s = _round_up(-(-S // n), 8)
    return block_s, n * block_s


# --------------------------------------------------------------------------- #
# Wrapper
# --------------------------------------------------------------------------- #
def weighted_sum(alpha, a, *, block_b=None, block_h=None, block_s=None,
                 vmem_limit_bytes=None):
    """Pallas TPU equivalent of torch.sum(alpha * a, dim=1).

    alpha: (B, S, 1) or (B, S);  a: (B, S, H)  ->  (B, H), dtype of `a`.
    """
    B, S, H = a.shape
    if alpha.ndim == 3:
        assert alpha.shape == (B, S, 1), (alpha.shape, a.shape)
        alpha2 = alpha.reshape(B, S)
    else:
        assert alpha.shape == (B, S), (alpha.shape, a.shape)
        alpha2 = alpha

    if vmem_limit_bytes is None:
        vmem_limit_bytes = _vmem_limit_bytes()

    # --- batch tile -----------------------------------------------------------
    if block_b is None:
        block_b = 8 if B % 8 == 0 else B
    assert B % block_b == 0 and (block_b == B or block_b % 8 == 0)
    n_b = B // block_b

    # --- hidden tile (parallel axis, lane-dense) -----------------------------
    if block_h is None:
        block_h = _default_block_h(H, n_b)
    assert H % block_h == 0 and (block_h == H or block_h % 128 == 0)
    n_h = H // block_h

    # --- sequence (reduction) tile: f32-temporary-aware VMEM budget ----------
    a_item = a.dtype.itemsize
    alpha_bytes = 2 * block_b * max(S, 128) * alpha2.dtype.itemsize
    out_bytes = 2 * block_b * block_h * a_item + block_b * block_h * 4
    if block_s is None:
        work_budget = max(2 * 1024 * 1024,
                          vmem_limit_bytes // 2 - alpha_bytes - out_bytes)
        # 2x double-buffered input tile + ~2 tile-sized f32 temps (astype+mul).
        bytes_per_row = max(1, block_b * block_h * (2 * a_item + 2 * 4))
        max_rows = max(8, work_budget // bytes_per_row)
        block_s, s_pad = _choose_block_s(S, max_rows)
    else:
        s_pad = _round_up(S, block_s)
    assert block_s == s_pad or block_s % 8 == 0

    a_p, alpha_p = a, alpha2
    if s_pad != S:
        # Zero alpha on the padded rows keeps the weighted sum exact.
        alpha_p = jnp.pad(alpha2, ((0, 0), (0, s_pad - S)))
        a_p = jnp.pad(a, ((0, 0), (0, s_pad - S), (0, 0)))

    n_s = s_pad // block_s
    grid = (n_b, n_h, n_s)

    # Lane-dense alpha, addressed by s-step along the first axis: (n_s, B, tS).
    # (tiny array; the reshape/transpose is a negligible wrapper op)
    alpha_t = alpha_p.reshape(B, n_s, block_s).transpose(1, 0, 2)

    out_dtype = a.dtype
    use_scratch = out_dtype != jnp.float32
    kernel = _make_kernel(use_scratch)
    scratch = [pltpu.VMEM((block_b, block_h), jnp.float32)] if use_scratch else []

    cost = pl.CostEstimate(
        flops=2 * B * S * H,
        transcendentals=0,
        bytes_accessed=(a_p.size * a_p.dtype.itemsize
                        + alpha_t.size * alpha_t.dtype.itemsize
                        + B * H * out_dtype.itemsize),
    )

    return pl.pallas_call(
        kernel,
        out_shape=jax.ShapeDtypeStruct((B, H), out_dtype),
        grid_spec=pltpu.PrefetchScalarGridSpec(
            num_scalar_prefetch=0,
            grid=grid,
            in_specs=[
                # alpha: resident across h and s (refetched only per b-tile).
                pl.BlockSpec((n_s, block_b, block_s), lambda b, h, s: (0, b, 0)),
                pl.BlockSpec((block_b, block_s, block_h),
                             lambda b, h, s: (b, s, h)),
            ],
            out_specs=pl.BlockSpec((block_b, block_h), lambda b, h, s: (b, h)),
            scratch_shapes=scratch,
        ),
        compiler_params=pltpu.CompilerParams(
            # b- and h-tiles are independent (megacore-shardable on v7x);
            # s is the reduction axis carried in the accumulator (last).
            dimension_semantics=("parallel", "parallel", "arbitrary"),
            vmem_limit_bytes=int(vmem_limit_bytes),
        ),
        cost_estimate=cost,
    )(alpha_t, a_p)


# --------------------------------------------------------------------------- #
# Self-test
# --------------------------------------------------------------------------- #
if __name__ == "__main__":
    key = jax.random.PRNGKey(0)
    keys = jax.random.split(key, 8)

    def ref_fn(alpha, a):
        return jnp.sum(alpha.astype(jnp.float32) * a.astype(jnp.float32), axis=1)

    # --- case 1: small shapes implied by the module (B, S, H) = (2, 8, 32) ---
    B, S, H = 2, 8, 32
    a1 = jax.random.normal(keys[0], (B, S, H), dtype=jnp.float32)
    al1 = jax.nn.softmax(
        jax.random.normal(keys[1], (B, S, 1), dtype=jnp.float32), axis=1)
    o1 = jax.block_until_ready(weighted_sum(al1, a1))
    assert o1.shape == (B, H)
    assert jnp.allclose(o1, ref_fn(al1, a1), atol=1e-5, rtol=1e-5)

    # --- case 2: multi-step S reduction + tiled H (parallel h axis) ----------
    B2, S2, H2 = 2, 64, 256
    a2 = jax.random.normal(keys[2], (B2, S2, H2), dtype=jnp.float32)
    al2 = jax.nn.softmax(
        jax.random.normal(keys[3], (B2, S2, 1), dtype=jnp.float32), axis=1)
    o2 = jax.block_until_ready(weighted_sum(al2, a2, block_s=16))
    assert o2.shape == (B2, H2)
    assert jnp.allclose(o2, ref_fn(al2, a2), atol=1e-4, rtol=1e-4)

    # --- case 3: bf16 inputs, f32 scratch accumulation ------------------------
    a3 = a2.astype(jnp.bfloat16)
    al3 = al2.astype(jnp.bfloat16)
    o3 = jax.block_until_ready(weighted_sum(al3, a3, block_s=16))
    assert o3.shape == (B2, H2)
    assert jnp.allclose(o3.astype(jnp.float32), ref_fn(al3, a3),
                        atol=2e-2, rtol=2e-2)

    # --- case 4: awkward S -> zero-padded tail tile ---------------------------
    B4, S4, H4 = 2, 20, 32
    a4 = jax.random.normal(keys[4], (B4, S4, H4), dtype=jnp.float32)
    al4 = jax.nn.softmax(
        jax.random.normal(keys[5], (B4, S4, 1), dtype=jnp.float32), axis=1)
    o4 = jax.block_until_ready(weighted_sum(al4, a4, block_s=16))
    assert o4.shape == (B4, H4)
    assert jnp.allclose(o4, ref_fn(al4, a4), atol=1e-5, rtol=1e-5)

    print("KERNEL_OK")
</pallas_src>

<mosaic_0001>
module attributes {stable_mosaic.version = 11 : i64} {
  func.func @kernel(%arg0: i32, %arg1: i32, %arg2: i32, %arg3: memref<1x2x8xf32, #tpu.memory_space<vmem>>, %arg4: memref<2x8x32xf32, #tpu.memory_space<vmem>>, %arg5: memref<2x32xf32, #tpu.memory_space<vmem>>) attributes {dimension_semantics = [#tpu.dimension_semantics<parallel>, #tpu.dimension_semantics<parallel>, #tpu.dimension_semantics<arbitrary>], iteration_bounds = array<i64: 1, 1, 1>, scalar_prefetch = 0 : i64, scratch_operands = 0 : i64, tpu.core_type = #tpu.core_type<tc>, window_params = [{transform_indices = @transform_0, window_bounds = array<i64: 1, 2, 8>}, {transform_indices = @transform_1, window_bounds = array<i64: 2, 8, 32>}, {transform_indices = @transform_2, window_bounds = array<i64: 2, 32>}]} {
    %c0_i32 = arith.constant 0 : i32
    %0 = arith.cmpi eq, %arg2, %c0_i32 : i32
    %1 = arith.extui %0 : i1 to i32
    %c0_i32_0 = arith.constant 0 : i32
    %2 = arith.cmpi ne, %1, %c0_i32_0 : i32
    scf.if %2 {
      %cst_9 = arith.constant 0.000000e+00 : f32
      %14 = vector.broadcast %cst_9 : f32 to vector<2x32xf32>
      %c0_10 = arith.constant 0 : index
      %c0_11 = arith.constant 0 : index
      %15 = vector.load %arg5[%c0_10, %c0_11] : memref<2x32xf32, #tpu.memory_space<vmem>>, vector<2x32xf32>
      tpu.vector_store %arg5[%c0_10, %c0_11], %14 {strides = array<i32>} : memref<2x32xf32, #tpu.memory_space<vmem>>, vector<2x32xf32>,
    } else {
    }
    %3 = arith.index_cast %arg2 : i32 to index
    %c0 = arith.constant 0 : index
    %c0_1 = arith.constant 0 : index
    %4 = vector.load %arg3[%3, %c0, %c0_1] : memref<1x2x8xf32, #tpu.memory_space<vmem>>, vector<1x2x8xf32>
    %5 = vector.shape_cast %4 : vector<1x2x8xf32> to vector<2x8xf32>
    %6 = vector.shape_cast %5 : vector<2x8xf32> to vector<2x8x1xf32>
    %c0_2 = arith.constant 0 : index
    %c0_3 = arith.constant 0 : index
    %c0_4 = arith.constant 0 : index
    %7 = vector.load %arg4[%c0_2, %c0_3, %c0_4] : memref<2x8x32xf32, #tpu.memory_space<vmem>>, vector<2x8x32xf32>
    %c0_5 = arith.constant 0 : index
    %c0_6 = arith.constant 0 : index
    %8 = vector.load %arg5[%c0_5, %c0_6] : memref<2x32xf32, #tpu.memory_space<vmem>>, vector<2x32xf32>
    %9 = vector.broadcast %6 : vector<2x8x1xf32> to vector<2x8x32xf32>
    %10 = arith.mulf %9, %7 : vector<2x8x32xf32>
    %cst = arith.constant dense<0.000000e+00> : vector<2x32xf32>
    %11 = vector.multi_reduction <add>, %10, %cst [1] : vector<2x8x32xf32> to vector<2x32xf32>
    %12 = arith.addf %8, %11 : vector<2x32xf32>
    %c0_7 = arith.constant 0 : index
    %c0_8 = arith.constant 0 : index
    %13 = vector.load %arg5[%c0_7, %c0_8] : memref<2x32xf32, #tpu.memory_space<vmem>>, vector<2x32xf32>
    tpu.vector_store %arg5[%c0_7, %c0_8], %12 {strides = array<i32>} : memref<2x32xf32, #tpu.memory_space<vmem>>, vector<2x32xf32>,
    return
  }
  func.func @transform_0(%arg0: i32, %arg1: i32, %arg2: i32) -> (i32, i32, i32) {
    %c0_i32 = arith.constant 0 : i32
    %c0_i32_0 = arith.constant 0 : i32
    %c0_i32_1 = arith.constant 0 : i32
    return %c0_i32, %arg0, %c0_i32_0 : i32, i32, i32
  }
  func.func @transform_1(%arg0: i32, %arg1: i32, %arg2: i32) -> (i32, i32, i32) {
    %c0_i32 = arith.constant 0 : i32
    return %arg0, %arg2, %arg1 : i32, i32, i32
  }
  func.func @transform_2(%arg0: i32, %arg1: i32, %arg2: i32) -> (i32, i32) {
    %c0_i32 = arith.constant 0 : i32
    return %arg0, %arg1 : i32, i32
  }
}

</mosaic_0001>

<bundles_post_ra>
// kernel: tpu_custom_call.1
= control target key start
LH: loop header
LB: loop body
LE: loop exit
PB: predicated region body
PF: predicated region fallthrough
CT: control target
= control target key end

     0   :  { %7 = vsyncpa [#allocation3], 0  ;;  %s228_s0 = inlined_call_operand.hbm [shape: f32[1,2,8], index: 0, kind: input, shape index: {}]   ;;  %s229_s1 = inlined_call_operand.hbm [shape: f32[2,8,32], index: 1, kind: input, shape index: {}]   ;;  %s230_s2 = inlined_call_operand.hbm [shape: f32[2,32], index: 2, kind: output, shape index: {}]  }
   0x1   :  { %8 = vsyncpa [#allocation6], 0 }
   0x2   :  { %9 = vsyncpa [#allocation4], 0  ;;  %s15_s11 = sshll.u32 %s228_s0, 4  ;;  %s196_s12 = smov [#allocation2]   ;;  %s16_s11 = int_to_ptr.hbm [resolvable:$true] %s15_s11 }
   0x3   :  { %s17_s13 = sshll.u32 %s196_s12, 4  ;;  %s25_s16 = sshll.u32 %s229_s1, 4  ;;  %s18_s13 = int_to_ptr.vmem [resolvable:$true] %s17_s13  ;;  %s26_s16 = int_to_ptr.hbm [resolvable:$true] %s25_s16 }
   0x4   :  { %20 = dma.hbm_to_vmem [thread:$0]  %s16_s11, 32, %s18_s13, [#allocation3]  }
   0x5   :  { %s197_s17 = smov [#allocation5]   ;;  %s198_s19 = smov 128  }
   0x6   :  { %s27_s18 = sshll.u32 %s197_s17, 4  ;;  %s199_s20 = smov 8   ;;  %s28_s18 = int_to_ptr.vmem [resolvable:$true] %s27_s18 }
   0x7   :  { %33 = dma.hbm_to_vmem [thread:$0]  %s26_s16, 256, %s28_s18, [#allocation6], %s198_s19, %s198_s19, %s199_s20  }
   0x8   :  { %190 = dma.done.wait [#allocation3], 32  }
   0x9   :  { %191 = vsyncadd [#allocation3], 4294967264 }
   0xa   :  { %192 = dma.done.wait [#allocation6], 256  }
   0xb   :  { %193 = vsyncadd [#allocation6], 4294967040  ;;  %v52_v0 = vlaneseq  ;;  %v50_v2 = vld [vmem:[#allocation2] sm:$0x3]  ;;  %vm46_vm0 = vcmask 254976   ;;  %v200_v5 = vmov 0.0  }
   0xc   :  { %v51_v3 = vperm.slane %v50_v2, 0  ;;  %v58_v4 = vperm.slane %v50_v2, 1  ;;  %47 = vst.msk [vmem:[#allocation7] sm:$0x3] %vm46_vm0, %v200_v5  ;;  %v65_v6 = vld [vmem:[#allocation5] sm:$0xff]  ;;  %vm70_vm1 = vcmask 261120  }
   0xd   :  { %v53_v1 = vshrl.u32 %v52_v0, 7  ;;  %v66_v12 = vld [vmem:[#allocation5 + $0x8] sm:$0xff]  ;;  %vm87_vm2 = vcmask 1041409   ;;  %s201_s0 = smov [#allocation7]   ;;  %s100_s23 = sshll.u32 %s230_s2, 4  ;;  %s101_s23 = int_to_ptr.hbm [resolvable:$true] %s100_s23 }
   0xe   :  { %s98_s1 = sshll.u32 %s201_s0, 4  ;;  %s99_s1 = int_to_ptr.vmem [resolvable:$true] %s98_s1 }
   0xf   :  { %117 = vset.pattern.permute.xlu0 %v53_v1 }
  0x13   :  { %v67_v26 = vld [vmem:[#allocation7] sm:$0x3] }
  0x17   :  { %56 = vperm.xlu0 %117, %v51_v3  }
  0x1f   :  { %63 = vperm.xlu0 %117, %v58_v4  }
  0x89   :  { %v57_v7 = vpop.permute.xlu0 %56 }
  0x8a   :  { %v68_v8 = vmul.f32 %v65_v6, %v57_v7 }
  0x8c   :  { %v71_v9 = vsel %vm70_vm1, %v68_v8, 0.0 }
  0x8d   :  { %v72_v10 = vrot.slane %v71_v9, 4 }
  0x8f   :  { %v73_v11 = vadd.f32 %v72_v10, %v71_v9 }
  0x91   :  { %v64_v13 = vpop.permute.xlu0 %63  ;;  %v74_v15 = vrot.slane %v73_v11, 2 }
  0x92   :  { %v69_v14 = vmul.f32 %v66_v12, %v64_v13 }
  0x93   :  { %v75_v18 = vadd.f32 %v74_v15, %v73_v11 }
  0x94   :  { %v78_v16 = vsel %vm70_vm1, %v69_v14, 0.0 }
  0x95   :  { %v79_v17 = vrot.slane %v78_v16, 4  ;;  %v76_v21 = vrot.slane %v75_v18, 1 }
  0x97   :  { %v80_v19 = vadd.f32 %v79_v17, %v78_v16  ;;  %v77_v24 = vadd.f32 %v76_v21, %v75_v18 }
  0x99   :  { %v81_v20 = vrot.slane %v80_v19, 2 }
  0x9b   :  { %v82_v22 = vadd.f32 %v81_v20, %v80_v19 }
  0x9d   :  { %v83_v23 = vrot.slane %v82_v22, 1 }
  0x9f   :  { %v84_v25 = vadd.f32 %v83_v23, %v82_v22 }
  0xa1   :  { %v88_v27 = vsel %vm87_vm2, %v84_v25, %v77_v24 }
  0xa2   :  { %v90_v28 = vadd.f32 %v88_v27, %v67_v26 }
  0xa4   :  { %92 = vst.msk [vmem:[#allocation7] sm:$0x3] %vm46_vm0, %v90_v28 }
  0xa5   :  { %103 = dma.vmem_to_hbm [thread:$0]  %s99_s1, 32, %s101_s23, [#allocation4]  }
  0xa6   :  { %194 = dma.done.wait [#allocation4], 32  }
  0xa7   :  { %195 = vsyncadd [#allocation4], 4294967264 }
  0xa8   :  { %108 = vsyncpa [#allocation3], 1 }
  0xa9   :  { %109 = vsyncpa [#allocation6], 1 }
  0xaa   :  { %110 = vsyncpa [#allocation4], 1 }

</bundles_post_ra>
